<compile_context>
chip_gen: v7x
topology: tpu7x:2x2x1
jax: 0.10.0
libtpu: 0.0.40
codegen_flags: <defaults>
</compile_context>

<pallas_src>
import jax
import jax.numpy as jnp
from jax.experimental import pallas as pl
from jax.experimental.pallas import tpu as pltpu


def _round_up(x, m):
    return (x + m - 1) // m * m


def _vmem_budgets():
    """Generation-aware (mask_budget_bytes, vmem_limit_bytes)."""
    cap = 64 * 1024 * 1024                      # assume v7x (smallest VMEM) if unknown
    try:
        info = pltpu.get_tpu_info()
        cap = int(getattr(info, "vmem_capacity_bytes", cap))
    except Exception:
        pass
    if cap >= 100 * 1024 * 1024:                # v5e / v6e: 128 MiB physical VMEM
        return 24 * 1024 * 1024, 96 * 1024 * 1024
    return 8 * 1024 * 1024, 48 * 1024 * 1024    # v7x: 64 MiB physical VMEM


# Approximate bytes of in-kernel temporaries per mask element
# (i32 node-iota + bool compare + bf16 mask).
_MASK_BYTES_PER_ELEM = 8


def _choose_pass1_tiles(n_pad, e_needed, mask_budget_bytes):
    """Pick (TILE_N, TILE_E) for the segment-sum pass under the mask budget."""
    tile_e = max(128, min(e_needed, 2048))
    while True:
        tile_n = (mask_budget_bytes // (tile_e * _MASK_BYTES_PER_ELEM)) // 128 * 128
        tile_n = min(tile_n, n_pad)
        if tile_n >= 128:
            return tile_n, tile_e
        if tile_e <= 128:
            return 128, 128                      # minimal configuration
        tile_e -= 128


def _node_sum_kernel(row_ref, val_ref, scale_ref, nsum_ref):
    """Pass 1: node_sum[h, n] += sum_{e in edge tile, row[e]==n} exp(v[h,e]*s[h])."""

    @pl.when(pl.program_id(1) == 0)
    def _init():
        nsum_ref[...] = jnp.zeros_like(nsum_ref)

    tile_n = nsum_ref.shape[1]
    node_base = pl.program_id(0) * tile_n

    p = jnp.exp(val_ref[...] * scale_ref[...])                 # (H, TILE_E) f32

    # One-hot scatter mask with edges on sublanes / nodes on lanes so the
    # contraction below is a plain (H,TILE_E)@(TILE_E,TILE_N) matmul.
    # Padding edges carry row = -1 and match no node.  bf16 is exact for 0/1.
    node_ids = node_base + jax.lax.broadcasted_iota(
        jnp.int32, (row_ref.shape[0], tile_n), 1)
    mask = (row_ref[...] == node_ids).astype(jnp.bfloat16)     # (TILE_E, TILE_N)

    # 3-term bf16 split of p accumulated in f32: with the exact 0/1 mask this
    # matches f32 accuracy at ~3 MXU passes (vs ~6 for Precision.HIGHEST).
    dims = (((1,), (0,)), ((), ()))
    p_hi = p.astype(jnp.bfloat16)
    r = p - p_hi.astype(jnp.float32)
    p_mid = r.astype(jnp.bfloat16)
    p_lo = (r - p_mid.astype(jnp.float32)).astype(jnp.bfloat16)
    acc = jax.lax.dot_general(p_hi, mask, dims, preferred_element_type=jnp.float32)
    acc = acc + jax.lax.dot_general(p_mid, mask, dims, preferred_element_type=jnp.float32)
    acc = acc + jax.lax.dot_general(p_lo, mask, dims, preferred_element_type=jnp.float32)
    nsum_ref[...] += acc


def _edge_softmax_kernel(val_ref, scale_ref, denom_ref, out_ref):
    """Pass 2: out[h, e] = exp(v[h,e]*s[h]) / node_sum[h, row[e]] (denom pre-gathered)."""
    out_ref[...] = jnp.exp(val_ref[...] * scale_ref[...]) / denom_ref[...]


def mul_edge_softmax(row, edge_val, num_nodes):
    """Pallas implementation of MulEdgeSoftmax.forward (CPU-path semantics).

    Args:
      row:       (E,) int edge "row" indices (graph.edge_index[0]).
      edge_val:  (E, H) or (E,) float edge values.
      num_nodes: int, number of nodes in the graph.
    Returns:
      (E, H) float32 softmax values (or (E,) if edge_val was 1-D).
    """
    squeeze = edge_val.ndim == 1
    if squeeze:
        edge_val = edge_val[:, None]
    E, H = edge_val.shape
    edge_val = edge_val.astype(jnp.float32)
    row = row.astype(jnp.int32)

    # Per-head halving loop ("while max > 10: v -= v/2"); halving is exact in
    # binary float, so it collapses to a single per-head scale 2^-k.
    head_max = jnp.max(edge_val, axis=0)                       # (H,)

    def cond(s):
        return jnp.any(head_max * s > 10.0)

    def body(s):
        return jnp.where(head_max * s > 10.0, s * 0.5, s)

    scale = jax.lax.while_loop(cond, body, jnp.ones((H,), jnp.float32))
    scale_h1 = scale[:, None]                                  # (H, 1)

    mask_budget_bytes, vmem_limit_bytes = _vmem_budgets()

    # ---------------- Pass 1: node_sum[h, n] = segment-sum of exp(v) --------
    n_pad0 = _round_up(max(int(num_nodes), 1), 128)
    e_needed = _round_up(max(E, 1), 128)
    tile_n, tile_e1 = _choose_pass1_tiles(n_pad0, e_needed, mask_budget_bytes)
    n_pad = _round_up(n_pad0, tile_n)
    e_pad1 = _round_up(max(E, 1), tile_e1)

    val_t = edge_val.T                                         # (H, E)
    val_he1 = jnp.zeros((H, e_pad1), jnp.float32).at[:, :E].set(val_t)
    row_e1 = jnp.full((e_pad1, 1), -1, jnp.int32).at[:E, 0].set(row)

    node_sum = pl.pallas_call(
        _node_sum_kernel,
        out_shape=jax.ShapeDtypeStruct((H, n_pad), jnp.float32),
        grid=(n_pad // tile_n, e_pad1 // tile_e1),
        in_specs=[
            pl.BlockSpec((tile_e1, 1), lambda j, i: (i, 0)),
            pl.BlockSpec((H, tile_e1), lambda j, i: (0, i)),
            pl.BlockSpec((H, 1), lambda j, i: (0, 0)),
        ],
        out_specs=pl.BlockSpec((H, tile_n), lambda j, i: (0, j)),
        compiler_params=pltpu.CompilerParams(
            dimension_semantics=("parallel", "arbitrary"),
            vmem_limit_bytes=vmem_limit_bytes),
    )(row_e1, val_he1, scale_h1)

    # ---------------- Pass 2: out = exp(v*s) / node_sum[row] ----------------
    # The per-edge denominator is a plain gather; do it once in XLA and keep
    # the kernel a large-tile, lane-dense elementwise op (O(E*H), HBM-bound).
    denom = node_sum[:, row]                                   # (H, E)

    tile_e2 = max(128, min(e_needed, 16384))                   # decoupled from mask budget
    e_pad2 = _round_up(max(E, 1), tile_e2)
    val_he2 = jnp.zeros((H, e_pad2), jnp.float32).at[:, :E].set(val_t)
    denom_he = jnp.ones((H, e_pad2), jnp.float32).at[:, :E].set(denom)

    out_he = pl.pallas_call(
        _edge_softmax_kernel,
        out_shape=jax.ShapeDtypeStruct((H, e_pad2), jnp.float32),
        grid=(e_pad2 // tile_e2,),
        in_specs=[
            pl.BlockSpec((H, tile_e2), lambda i: (0, i)),
            pl.BlockSpec((H, 1), lambda i: (0, 0)),
            pl.BlockSpec((H, tile_e2), lambda i: (0, i)),
        ],
        out_specs=pl.BlockSpec((H, tile_e2), lambda i: (0, i)),
        compiler_params=pltpu.CompilerParams(
            dimension_semantics=("parallel",),
            vmem_limit_bytes=vmem_limit_bytes),
    )(val_he2, scale_h1, denom_he)

    out = out_he[:, :E].T
    if squeeze:
        out = out[:, 0]
    return out


def _reference(row, edge_val, num_nodes):
    """Pure-JAX emulation of the PyTorch CPU path (loop over heads)."""
    ev = edge_val if edge_val.ndim == 2 else edge_val[:, None]
    cols = []
    for i in range(ev.shape[1]):
        v = ev[:, i].astype(jnp.float32)
        m = float(jnp.max(v))
        while m > 10.0:
            v = v - v / 2
            m = float(jnp.max(v))
        p = jnp.exp(v)
        node_sum = jax.ops.segment_sum(p, row, num_segments=num_nodes)
        cols.append(p / node_sum[row])
    return jnp.stack(cols, axis=1)


if __name__ == "__main__":
    key = jax.random.PRNGKey(0)
    k_row, k_val = jax.random.split(key)

    num_nodes = 16   # N
    num_edges = 40   # E
    num_heads = 4    # H

    # Deterministic synthetic graph: edge "row" (destination) indices.
    row = jax.random.randint(k_row, (num_edges,), 0, num_nodes, dtype=jnp.int32)
    # Edge values; scale one head so the "> 10" halving loop is exercised.
    edge_val = jax.random.normal(k_val, (num_edges, num_heads), dtype=jnp.float32)
    edge_val = edge_val.at[:, 1].multiply(20.0)

    out = mul_edge_softmax(row, edge_val, num_nodes)
    out = jax.block_until_ready(out)

    ref = _reference(row, edge_val, num_nodes)
    assert out.shape == (num_edges, num_heads)
    assert jnp.allclose(out, ref, rtol=1e-5, atol=1e-6), (
        "mismatch vs reference: max abs err "
        f"{float(jnp.max(jnp.abs(out - ref)))}")

    print("KERNEL_OK")
</pallas_src>

<mosaic_0001>
module attributes {stable_mosaic.version = 11 : i64} {
  func.func @_node_sum_kernel(%arg0: i32, %arg1: i32, %arg2: memref<128x1xi32, #tpu.memory_space<vmem>>, %arg3: memref<4x128xf32, #tpu.memory_space<vmem>>, %arg4: memref<4x1xf32, #tpu.memory_space<vmem>>, %arg5: memref<4x128xf32, #tpu.memory_space<vmem>>) attributes {dimension_semantics = [#tpu.dimension_semantics<parallel>, #tpu.dimension_semantics<arbitrary>], iteration_bounds = array<i64: 1, 1>, scalar_prefetch = 0 : i64, scratch_operands = 0 : i64, tpu.core_type = #tpu.core_type<tc>, window_params = [{transform_indices = @transform_0, window_bounds = array<i64: 128, 1>}, {transform_indices = @transform_1, window_bounds = array<i64: 4, 128>}, {pipeline_mode = #tpu.pipeline_mode<synchronous>, transform_indices = @transform_2, window_bounds = array<i64: 4, 1>}, {transform_indices = @transform_3, window_bounds = array<i64: 4, 128>}]} {
    %c0_i32 = arith.constant 0 : i32
    %0 = arith.cmpi eq, %arg1, %c0_i32 : i32
    %1 = arith.extui %0 : i1 to i32
    %c0_i32_0 = arith.constant 0 : i32
    %2 = arith.cmpi ne, %1, %c0_i32_0 : i32
    scf.if %2 {
      %cst_12 = arith.constant 0.000000e+00 : f32
      %33 = vector.broadcast %cst_12 : f32 to vector<4x128xf32>
      %c0_13 = arith.constant 0 : index
      %c0_14 = arith.constant 0 : index
      %34 = vector.load %arg5[%c0_13, %c0_14] : memref<4x128xf32, #tpu.memory_space<vmem>>, vector<4x128xf32>
      tpu.vector_store %arg5[%c0_13, %c0_14], %33 {strides = array<i32>} : memref<4x128xf32, #tpu.memory_space<vmem>>, vector<4x128xf32>,
    } else {
    }
    %c128_i32 = arith.constant 128 : i32
    %3 = arith.muli %arg0, %c128_i32 : i32
    %c0 = arith.constant 0 : index
    %c0_1 = arith.constant 0 : index
    %4 = vector.load %arg3[%c0, %c0_1] : memref<4x128xf32, #tpu.memory_space<vmem>>, vector<4x128xf32>
    %c0_2 = arith.constant 0 : index
    %c0_3 = arith.constant 0 : index
    %5 = vector.load %arg4[%c0_2, %c0_3] : memref<4x1xf32, #tpu.memory_space<vmem>>, vector<4x1xf32>
    %6 = vector.broadcast %5 : vector<4x1xf32> to vector<4x128xf32>
    %7 = arith.mulf %4, %6 : vector<4x128xf32>
    %8 = math.exp %7 : vector<4x128xf32>
    %9 = tpu.iota {dimensions = array<i32: 1>} : vector<128x128xi32>
    %10 = vector.broadcast %3 : i32 to vector<128x128xi32>
    %11 = arith.addi %10, %9 : vector<128x128xi32>
    %c0_4 = arith.constant 0 : index
    %c0_5 = arith.constant 0 : index
    %12 = vector.load %arg2[%c0_4, %c0_5] : memref<128x1xi32, #tpu.memory_space<vmem>>, vector<128x1xi32>
    %13 = vector.broadcast %12 : vector<128x1xi32> to vector<128x128xi32>
    %14 = arith.cmpi eq, %13, %11 : vector<128x128xi32>
    %15 = arith.extui %14 : vector<128x128xi1> to vector<128x128xi32>
    %16 = arith.sitofp %15 : vector<128x128xi32> to vector<128x128xf32>
    %17 = arith.truncf %16 : vector<128x128xf32> to vector<128x128xbf16>
    %18 = arith.truncf %8 : vector<4x128xf32> to vector<4x128xbf16>
    %19 = arith.extf %18 : vector<4x128xbf16> to vector<4x128xf32>
    %20 = arith.subf %8, %19 : vector<4x128xf32>
    %21 = arith.truncf %20 : vector<4x128xf32> to vector<4x128xbf16>
    %22 = arith.extf %21 : vector<4x128xbf16> to vector<4x128xf32>
    %23 = arith.subf %20, %22 : vector<4x128xf32>
    %24 = arith.truncf %23 : vector<4x128xf32> to vector<4x128xbf16>
    %cst = arith.constant dense<0.000000e+00> : vector<4x128xf32>
    %25 = tpu.matmul %18, %17, %cst {dimension_numbers = #tpu.dot_dimension_numbers<[1], [0], [0], [1], [0, 0, 1, 1], [], []>} : vector<4x128xbf16>, vector<128x128xbf16>, vector<4x128xf32> -> vector<4x128xf32>
    %cst_6 = arith.constant dense<0.000000e+00> : vector<4x128xf32>
    %26 = tpu.matmul %21, %17, %cst_6 {dimension_numbers = #tpu.dot_dimension_numbers<[1], [0], [0], [1], [0, 0, 1, 1], [], []>} : vector<4x128xbf16>, vector<128x128xbf16>, vector<4x128xf32> -> vector<4x128xf32>
    %27 = arith.addf %25, %26 : vector<4x128xf32>
    %cst_7 = arith.constant dense<0.000000e+00> : vector<4x128xf32>
    %28 = tpu.matmul %24, %17, %cst_7 {dimension_numbers = #tpu.dot_dimension_numbers<[1], [0], [0], [1], [0, 0, 1, 1], [], []>} : vector<4x128xbf16>, vector<128x128xbf16>, vector<4x128xf32> -> vector<4x128xf32>
    %29 = arith.addf %27, %28 : vector<4x128xf32>
    %c0_8 = arith.constant 0 : index
    %c0_9 = arith.constant 0 : index
    %30 = vector.load %arg5[%c0_8, %c0_9] : memref<4x128xf32, #tpu.memory_space<vmem>>, vector<4x128xf32>
    %31 = arith.addf %30, %29 : vector<4x128xf32>
    %c0_10 = arith.constant 0 : index
    %c0_11 = arith.constant 0 : index
    %32 = vector.load %arg5[%c0_10, %c0_11] : memref<4x128xf32, #tpu.memory_space<vmem>>, vector<4x128xf32>
    tpu.vector_store %arg5[%c0_10, %c0_11], %31 {strides = array<i32>} : memref<4x128xf32, #tpu.memory_space<vmem>>, vector<4x128xf32>,
    return
  }
  func.func @transform_0(%arg0: i32, %arg1: i32) -> (i32, i32) {
    %c0_i32 = arith.constant 0 : i32
    %c0_i32_0 = arith.constant 0 : i32
    return %arg1, %c0_i32 : i32, i32
  }
  func.func @transform_1(%arg0: i32, %arg1: i32) -> (i32, i32) {
    %c0_i32 = arith.constant 0 : i32
    %c0_i32_0 = arith.constant 0 : i32
    return %c0_i32, %arg1 : i32, i32
  }
  func.func @transform_2(%arg0: i32, %arg1: i32) -> (i32, i32) {
    %c0_i32 = arith.constant 0 : i32
    %c0_i32_0 = arith.constant 0 : i32
    %c0_i32_1 = arith.constant 0 : i32
    return %c0_i32, %c0_i32_0 : i32, i32
  }
  func.func @transform_3(%arg0: i32, %arg1: i32) -> (i32, i32) {
    %c0_i32 = arith.constant 0 : i32
    %c0_i32_0 = arith.constant 0 : i32
    return %c0_i32, %arg0 : i32, i32
  }
}

</mosaic_0001>

<bundles_post_ra>
// kernel: tpu_custom_call.1
= control target key start
LH: loop header
LB: loop body
LE: loop exit
PB: predicated region body
PF: predicated region fallthrough
CT: control target
= control target key end

     0   :  { %v485_v2 = vmov 0   ;;  %s729_s0 = inlined_call_operand.vmem [shape: s32[128,1], index: 0, kind: input, shape index: {}]   ;;  %s730_s1 = inlined_call_operand.vmem [shape: f32[4,128], index: 1, kind: input, shape index: {}]   ;;  %s731_s2 = inlined_call_operand.vmem [shape: f32[4,1], index: 2, kind: input, shape index: {}]   ;;  %s732_s3 = inlined_call_operand.hbm [shape: f32[4,128], index: 3, kind: output, shape index: {}]  }
   0x1   :  { %v38_v0 = vld [vmem:[%s729_s0 + $0x10] sm:$0xff]  ;;  %v36_v1 = vld [vmem:[%s729_s0] sm:$0xff]  ;;  %458 = vset.pattern.permute.xlu1 %v485_v2  ;;  %457 = vset.pattern.permute.xlu0 %v485_v2  ;;  %v39_v3 = vld [vmem:[%s729_s0 + $0x18] sm:$0xff] }
   0x2   :  { %59 = vperm.xlu1 %458, %v38_v0   ;;  %53 = vperm.xlu0 %457, %v36_v1   ;;  %v37_v4 = vld [vmem:[%s729_s0 + $0x8] sm:$0xff] }
   0x3   :  { %8 = vsyncpa [#allocation3], 0  ;;  %v41_v5 = vld [vmem:[%s729_s0 + $0x28] sm:$0xff]  ;;  %v40_v6 = vld [vmem:[%s729_s0 + $0x20] sm:$0xff]  ;;  %v486_v7 = vmov 0.0   ;;  %vm487_vm0 = vmmov 0   ;;  %v32_v19 = vlaneseq }
   0x4   :  { %392 = vmatprep.subr.bf16.mxu0 %v486_v7  ;;  %20 = vst [vmem:[#allocation2] sm:$0xf] %v486_v7  ;;  %412 = vmatprep.subr.bf16.mxu1 %v486_v7  ;;  %v42_v8 = vld [vmem:[%s729_s0 + $0x30] sm:$0xff]  ;;  %v23_v9 = vld [vmem:[%s731_s2] sm:$0xf]  ;;  %v43_v11 = vld [vmem:[%s729_s0 + $0x38] sm:$0xff] }
   0x5   :  { %v44_v10 = vld [vmem:[%s729_s0 + $0x40] sm:$0xff]  ;;  %v46_v12 = vld [vmem:[%s729_s0 + $0x50] sm:$0xff]  ;;  %v45_v13 = vld [vmem:[%s729_s0 + $0x48] sm:$0xff]  ;;  %408 = vmatprep.mubr.msk.bf16.mxu0 %vm487_vm0, %v486_v7  ;;  %428 = vmatprep.mubr.msk.bf16.mxu1 %vm487_vm0, %v486_v7  ;;  %v568_v22 = vand.u32 127, %v32_v19  ;;  %v488_v26 = vmov 1.0|1.0  }
   0x6   :  { %62 = vperm.xlu1 %458, %v39_v3   ;;  %56 = vperm.xlu0 %457, %v37_v4   ;;  %v48_v14 = vld [vmem:[%s729_s0 + $0x60] sm:$0xff]  ;;  %v47_v15 = vld [vmem:[%s729_s0 + $0x58] sm:$0xff]  ;;  %v50_v16 = vld [vmem:[%s729_s0 + $0x70] sm:$0xff] }
   0x7   :  { %v49_v17 = vld [vmem:[%s729_s0 + $0x68] sm:$0xff]  ;;  %v51_v18 = vld [vmem:[%s729_s0 + $0x78] sm:$0xff]  ;;  %v22_v29 = vld [vmem:[%s730_s1] sm:$0xf]  ;;  %s489_s1 = smov [#allocation2]  }
   0x8   :  { %s293_s19 = sshll.u32 %s489_s1, 4  ;;  %s294_s19 = int_to_ptr.vmem [resolvable:$true] %s293_s19 }
   0x9   :  { %s461_s20 = scalar_lea.vmem %s294_s19, 64  ;;  %p466_p1 = scmp.lt.s32.totalorder %s294_s19, %s294_s19 }
   0xa   :  { %68 = vperm.xlu1 %458, %v41_v5   ;;  %65 = vperm.xlu0 %457, %v40_v6   ;;  %p462_p0 = scmp.ne.s32.totalorder %s294_s19, %s461_s20  ;;  %p467_p2 = scmp.lt.s32.totalorder %s461_s20, %s461_s20 }
   0xb   :  { %v284_v4 = vld [vmem:[#allocation2] sm:$0xf] }
   0xc   :  { %p468_p3 = por %p467_p2, %p466_p1 }
   0xe   :  { %71 = vperm.xlu1 %458, %v42_v8   ;;  %26 = vperm.xlu0 %457, %v23_v9   ;;  %p469_p4 = pnand %p468_p3, %p462_p0 }
  0x12   :  { %77 = vperm.xlu1 %458, %v44_v10   ;;  %74 = vperm.xlu0 %457, %v43_v11  }
  0x16   :  { %83 = vperm.xlu1 %458, %v46_v12   ;;  %80 = vperm.xlu0 %457, %v45_v13  }
  0x1a   :  { %89 = vperm.xlu1 %458, %v48_v14   ;;  %86 = vperm.xlu0 %457, %v47_v15  }
  0x1e   :  { %95 = vperm.xlu1 %458, %v50_v16   ;;  %92 = vperm.xlu0 %457, %v49_v17  }
  0x22   :  { %98 = vperm.xlu0 %457, %v51_v18  }
  0x81   :  { %v60_v20 = vpop.permute.xlu1 %59  ;;  %v54_v21 = vpop.permute.xlu0 %53 }
  0x82   :  { %vm100_vm2 = vcmp.eq.s32.totalorder %v54_v21, %v568_v22  ;;  %vm102_vm4 = vcmp.eq.s32.totalorder %v60_v20, %v568_v22 }
  0x85   :  { %v63_v23 = vpop.permute.xlu1 %62  ;;  %v57_v24 = vpop.permute.xlu0 %56 }
  0x86   :  { %vm101_vm1 = vcmp.eq.s32.totalorder %v57_v24, %v568_v22  ;;  %vm103_vm5 = vcmp.eq.s32.totalorder %v63_v23, %v568_v22 }
  0x87   :  { %vm572_vm3 = vmpackc.low %vm101_vm1, %vm100_vm2 }
  0x88   :  { %393 = vmatpush3.bf16.msk.msra.mxu0 %vm572_vm3, %v488_v26  ;;  %413 = vmatpush3.bf16.msk.msra.mxu1 %vm572_vm3, %v488_v26  ;;  %vm589_vm6 = vmpackc.low %vm103_vm5, %vm102_vm4 }
  0x89   :  { %v69_v27 = vpop.permute.xlu1 %68  ;;  %v66_v28 = vpop.permute.xlu0 %65  ;;  %394 = vmatprep.subr.bf16.mxu0 %v486_v7  ;;  %414 = vmatprep.subr.bf16.mxu1 %v486_v7 }
  0x8a   :  { %vm105_vm7 = vcmp.eq.s32.totalorder %v69_v27, %v568_v22  ;;  %vm104_vm8 = vcmp.eq.s32.totalorder %v66_v28, %v568_v22 }
  0x8b   :  { %vm603_vm9 = vmpackc.low %vm105_vm7, %vm104_vm8 }
  0x8c   :  { %395 = vmatpush3.bf16.msk.msra.mxu0 %vm589_vm6, %v488_v26  ;;  %415 = vmatpush3.bf16.msk.msra.mxu1 %vm589_vm6, %v488_v26 }
  0x8d   :  { %v72_v31 = vpop.permute.xlu1 %71  ;;  %v27_v32 = vpop.permute.xlu0 %26  ;;  %396 = vmatprep.subr.bf16.mxu0 %v486_v7  ;;  %416 = vmatprep.subr.bf16.mxu1 %v486_v7 }
  0x8e   :  { %v29_v33 = vmul.f32 %v27_v32, %v22_v29  ;;  %vm106_vm10 = vcmp.eq.s32.totalorder %v72_v31, %v568_v22 }
  0x90   :  { %v30_v35 = vmul.f32 1.442695, %v29_v33  ;;  %397 = vmatpush3.bf16.msk.msra.mxu0 %vm603_vm9, %v488_v26  ;;  %417 = vmatpush3.bf16.msk.msra.mxu1 %vm603_vm9, %v488_v26 }
  0x91   :  { %v78_v36 = vpop.permute.xlu1 %77  ;;  %v75_v37 = vpop.permute.xlu0 %74  ;;  %398 = vmatprep.subr.bf16.mxu0 %v486_v7  ;;  %418 = vmatprep.subr.bf16.mxu1 %v486_v7 }
  0x92   :  { %459 = vpow2.f32 %v30_v35  ;;  %vm107_vm11 = vcmp.eq.s32.totalorder %v75_v37, %v568_v22  ;;  %vm108_vm13 = vcmp.eq.s32.totalorder %v78_v36, %v568_v22 }
  0x93   :  { %vm617_vm12 = vmpackc.low %vm107_vm11, %vm106_vm10 }
  0x94   :  { %399 = vmatpush3.bf16.msk.msra.mxu0 %vm617_vm12, %v488_v26  ;;  %419 = vmatpush3.bf16.msk.msra.mxu1 %vm617_vm12, %v488_v26 }
  0x95   :  { %v84_v39 = vpop.permute.xlu1 %83  ;;  %v81_v40 = vpop.permute.xlu0 %80  ;;  %400 = vmatprep.subr.bf16.mxu0 %v486_v7  ;;  %420 = vmatprep.subr.bf16.mxu1 %v486_v7 }
  0x96   :  { %vm109_vm14 = vcmp.eq.s32.totalorder %v81_v40, %v568_v22  ;;  %vm110_vm1 = vcmp.eq.s32.totalorder %v84_v39, %v568_v22 }
  0x97   :  { %vm631_vm15 = vmpackc.low %vm109_vm14, %vm108_vm13 }
  0x98   :  { %401 = vmatpush3.bf16.msk.msra.mxu0 %vm631_vm15, %v488_v26  ;;  %421 = vmatpush3.bf16.msk.msra.mxu1 %vm631_vm15, %v488_v26 }
  0x99   :  { %v90_v42 = vpop.permute.xlu1 %89  ;;  %v87_v43 = vpop.permute.xlu0 %86  ;;  %402 = vmatprep.subr.bf16.mxu0 %v486_v7  ;;  %422 = vmatprep.subr.bf16.mxu1 %v486_v7 }
  0x9a   :  { %vm111_vm2 = vcmp.eq.s32.totalorder %v87_v43, %v568_v22  ;;  %vm112_vm5 = vcmp.eq.s32.totalorder %v90_v42, %v568_v22 }
  0x9b   :  { %vm645_vm4 = vmpackc.low %vm111_vm2, %vm110_vm1 }
  0x9c   :  { %v460_v45 = vpop.eup %459  ;;  %403 = vmatpush3.bf16.msk.msra.mxu0 %vm645_vm4, %v488_v26  ;;  %423 = vmatpush3.bf16.msk.msra.mxu1 %vm645_vm4, %v488_v26 }
  0x9d   :  { %v93_v46 = vpop.permute.xlu0 %92  ;;  %v156_v47 = vpack.c.bf16 %v460_v45, %v460_v45  ;;  %404 = vmatprep.subr.bf16.mxu0 %v486_v7  ;;  %424 = vmatprep.subr.bf16.mxu1 %v486_v7  ;;  %v96_v48 = vpop.permute.xlu1 %95 }
  0x9e   :  { %vm113_vm7 = vcmp.eq.s32.totalorder %v93_v46, %v568_v22  ;;  %vm114_vm10 = vcmp.eq.s32.totalorder %v96_v48, %v568_v22 }
  0x9f   :  { %vm659_vm8 = vmpackc.low %vm113_vm7, %vm112_vm5  ;;  %v157_v50 = vunpack.c.l.bf16 %v156_v47 }
  0xa0   :  { %405 = vmatpush3.bf16.msk.msra.mxu0 %vm659_vm8, %v488_v26  ;;  %425 = vmatpush3.bf16.msk.msra.mxu1 %vm659_vm8, %v488_v26 }
  0xa1   :  { %v99_v51 = vpop.permute.xlu0 %98  ;;  %406 = vmatprep.subr.bf16.mxu0 %v486_v7  ;;  %426 = vmatprep.subr.bf16.mxu1 %v486_v7  ;;  %v158_v52 = vsub.f32 %v460_v45, %v157_v50 }
  0xa2   :  { %vm115_vm11 = vcmp.eq.s32.totalorder %v99_v51, %v568_v22 }
  0xa3   :  { %vm673_vm13 = vmpackc.low %vm115_vm11, %vm114_vm10  ;;  %v159_v54 = vpack.c.bf16 %v158_v52, %v158_v52 }
  0xa4   :  { %407 = vmatpush3.bf16.msk.msra.mxu0 %vm673_vm13, %v488_v26  ;;  %427 = vmatpush3.bf16.msk.msra.mxu1 %vm673_vm13, %v488_v26 }
  0xa5   :  { %432 = vmatprep.subr.bf16.mxu0 %v486_v7  ;;  %v160_v55 = vunpack.c.l.bf16 %v159_v54 }
  0xa7   :  { %409 = vmatmul.mubr.bf16.vlgmr.msra.gmra.mrb[0].mxu0 %v159_v54  ;;  %429 = vmatmul.mubr.bf16.vlgmr.msra.gmra.mrb[0].mxu1 %v156_v47  ;;  %v161_v56 = vsub.f32 %v158_v52, %v160_v55 }
  0xa8   :  { %433 = vmatpush3.bf16.msk.msra.mxu0 %vm572_vm3, %v488_v26  ;;  %448 = vmatprep.mubr.msk.bf16.mxu0 %vm487_vm0, %v486_v7 }
  0xa9   :  { %434 = vmatprep.subr.bf16.mxu0 %v486_v7  ;;  %v162_v57 = vpack.c.bf16 %v161_v56, %v161_v56 }
  0xac   :  { %435 = vmatpush3.bf16.msk.msra.mxu0 %vm589_vm6, %v488_v26 }
  0xad   :  { %436 = vmatprep.subr.bf16.mxu0 %v486_v7 }
  0xb0   :  { %437 = vmatpush3.bf16.msk.msra.mxu0 %vm603_vm9, %v488_v26 }
  0xb1   :  { %438 = vmatprep.subr.bf16.mxu0 %v486_v7 }
  0xb4   :  { %439 = vmatpush3.bf16.msk.msra.mxu0 %vm617_vm12, %v488_v26 }
  0xb5   :  { %440 = vmatprep.subr.bf16.mxu0 %v486_v7 }
  0xb8   :  { %441 = vmatpush3.bf16.msk.msra.mxu0 %vm631_vm15, %v488_v26 }
  0xb9   :  { %442 = vmatprep.subr.bf16.mxu0 %v486_v7 }
  0xbc   :  { %443 = vmatpush3.bf16.msk.msra.mxu0 %vm645_vm4, %v488_v26 }
  0xbd   :  { %444 = vmatprep.subr.bf16.mxu0 %v486_v7 }
  0xc0   :  { %445 = vmatpush3.bf16.msk.msra.mxu0 %vm659_vm8, %v488_v26 }
  0xc1   :  { %446 = vmatprep.subr.bf16.mxu0 %v486_v7 }
  0xc4   :  { %447 = vmatpush3.bf16.msk.msra.mxu0 %vm673_vm13, %v488_v26 }
  0xc7   :  { %449 = vmatmul.mubr.bf16.vlgmr.msra.gmra.mrb[4].mxu0 %v162_v57 }
 0x17a   :  { %v197_v58 = vpop.f32.mrb[0].mxu0  ;;  %v237_v59 = vpop.f32.mrb[0].mxu1 }
 0x17b   :  { %v238_v60 = vadd.f32 %v237_v59, %v197_v58  ;;  %v410_v61 = vpop.f32.mrb[1].mxu0  ;;  %v430_v62 = vpop.f32.mrb[1].mxu1 }
 0x17c   :  { %v200_v63 = vpop.f32.mrb[2].mxu0  ;;  %v240_v0 = vpop.f32.mrb[2].mxu1 }
 0x17d   :  { %v411_v1 = vpop.f32.mrb[3].mxu0  ;;  %v431_v2 = vpop.f32.mrb[3].mxu1 }
 0x19a   :  { %v277_v3 = vpop.f32.mrb[4].mxu0 }
 0x19b   :  { %v283_v5 = vadd.f32 %v277_v3, %v238_v60  ;;  %v450_v6 = vpop.f32.mrb[5].mxu0 }
 0x19c   :  { %v280_v7 = vpop.f32.mrb[6].mxu0 }
 0x19d   :  { %v285_v8 = vadd.f32 %v284_v4, %v283_v5  ;;  %v451_v9 = vpop.f32.mrb[7].mxu0 }
 0x19f   :  { %286 = vst [vmem:[#allocation2] sm:$0xf] %v285_v8 }
 0x1a0   :  { %472 = shalt.err (!%p469_p4)
}
 0x1a1   :  { %s473_s23 = scalar_lea.hbm %s732_s3, 64 }
 0x1a2   :  { %p474_p5 = scmp.ne.s32.totalorder %s732_s3, %s473_s23  ;;  %p477_p6 = scmp.lt.u32.totalorder %s473_s23, %s732_s3 }
 0x1a4   :  { %p479_p7 = pnand %p477_p6, %p474_p5 }
 0x1a6   :  { %482 = shalt.err (!%p479_p7)
}
 0x1a7   :  { %296 = dma.vmem_to_hbm [thread:$0]  %s294_s19, 64, %s732_s3, [#allocation3]  }
 0x1a8   :  { %483 = dma.done.wait [#allocation3], 64  }
 0x1a9   :  { %484 = vsyncadd [#allocation3], 4294967232 }
 0x1aa   :  { %300 = vsyncpa [#allocation3], 1 }

</bundles_post_ra>
